<compile_context>
chip_gen: v5e
topology: v5e:2x2
jax: 0.10.0
libtpu: 0.0.40
codegen_flags: <defaults>
</compile_context>

<pallas_src>
import functools

import jax
import jax.numpy as jnp
from jax.experimental import pallas as pl
from jax.experimental.pallas import tpu as pltpu

_LANES = 128
# Per pred/gt block compute footprint cap (f32 bytes).  ~2 MiB sits on the flat part of
# the HBM-roofline tile sweep (>=85%) while 2 pipeline buffers x (pred+gt+mask) blocks
# plus elementwise temporaries stay well inside the requested 48 MiB scoped VMEM.
_MAX_BLOCK_BYTES = 2 * 1024 * 1024
_VMEM_LIMIT_BYTES = 48 * 1024 * 1024   # safe on v7x (64 MiB phys); raises v5e/v6e defaults


def _fold_to_8_rows(x):
    """(R, L) -> (8, L) partial sum.

    Pure cross-vreg VPU adds when R % 8 == 0 (the large-block case); falls back to one
    sublane (XLU) reduction placed in row 0 for small / odd single-tile blocks.
    """
    R, L = x.shape
    if R % 8 == 0:
        return x.reshape(R // 8, 8, L).sum(axis=0)
    s = jnp.sum(x, axis=0, keepdims=True)                       # (1, L)
    rows = jax.lax.broadcasted_iota(jnp.int32, (8, L), 0)
    return jnp.where(rows == 0, s, 0.0)


def _focal_kernel(*refs, has_mask, rows_total):
    """Grid = (batch, row_tile).

    Block shapes:
      pred/gt : (1, C, block_R, L)
      mask    : (1, block_R, L)            (broadcast over C in-register)
      out     : (1, 16, L)   rows 0-7 = focal-loss partial, rows 8-15 = num_pos partial
    """
    if has_mask:
        pred_ref, gt_ref, mask_ref, out_ref = refs
    else:
        pred_ref, gt_ref, out_ref = refs

    pred = pred_ref[0].astype(jnp.float32)         # (C, R, L)
    gt = gt_ref[0].astype(jnp.float32)

    # NOTE: like the PyTorch reference, assumes the caller keeps pred away from {0, 1}
    # (CenterNet heads clamp the sigmoid) and that gt lies in [0, 1].  Under gt <= 1 the
    # reference's neg_inds = (gt < 1) multiply is redundant: gt == 1 elements are routed
    # to the positive branch by the select below, everything else is a negative.
    pos = gt == 1.0
    one_m_pred = 1.0 - pred
    sel = jnp.where(pos, pred, one_m_pred)
    one_m_gt = 1.0 - gt
    sq = one_m_gt * one_m_gt                        # (1 - gt)^2
    w = jnp.where(pos, one_m_pred * one_m_pred, (pred * pred) * (sq * sq))

    if has_mask:
        m = mask_ref[0].astype(jnp.float32)[None]   # (1, R, L), broadcast over channels
        w = w * m
        npos_el = jnp.where(pos, m, 0.0)
    else:
        npos_el = jnp.where(pos, 1.0, 0.0)

    contrib = jnp.log(sel) * w                      # == pos_loss + neg_loss, elementwise

    if rows_total is not None:
        # The last row tile overhangs the array; its out-of-bounds rows hold unspecified
        # data.  Kill their contribution with a select (not a multiply) so garbage
        # NaN/Inf cannot leak through 0 * Inf.
        r = pl.program_id(1)
        C, R, L = pred.shape
        row = jax.lax.broadcasted_iota(jnp.int32, (1, R, L), 1)
        valid = (r * R + row) < rows_total
        contrib = jnp.where(valid, contrib, 0.0)
        npos_el = jnp.where(valid, npos_el, 0.0)

    out_ref[0, 0:8, :] = _fold_to_8_rows(jnp.sum(contrib, axis=0))
    out_ref[0, 8:16, :] = _fold_to_8_rows(jnp.sum(npos_el, axis=0))


def focal_loss_centernet(out, target, mask=None, *, max_block_bytes=_MAX_BLOCK_BYTES):
    """JAX/Pallas equivalent of FocalLossCenterNet.forward(out, target, mask)."""
    B, C, H, W = out.shape
    S = H * W

    # Zero-copy views only (no jnp.pad -> no extra HBM round trip):
    #   * H*W % 128 == 0: view the spatial plane as dense 128-lane rows (free reshape);
    #   * otherwise keep the native (H, W) layout: rows = H, lanes = W (full-dim block).
    if S % _LANES == 0:
        R_total, L = S // _LANES, _LANES
        pred_v = out.reshape(B, C, R_total, L)
        gt_v = target.reshape(B, C, R_total, L)
        mask_v = None if mask is None else mask.reshape(B, R_total, L)
    else:
        R_total, L = H, W
        pred_v, gt_v, mask_v = out, target, mask

    # Row-tile size: whole channel axis folded into the block, as many rows as fit the
    # per-block byte budget.  Sublane alignment follows the narrowest input dtype
    # (8 rows for 32-bit, 16 for 16-bit, 32 for 8-bit inputs).
    itemsizes = [out.dtype.itemsize, target.dtype.itemsize]
    if mask is not None:
        itemsizes.append(mask.dtype.itemsize)
    align = max(8, 32 // min(itemsizes))
    max_rows = (max_block_bytes // 4) // (C * L)
    cap_rows = max(align, (max_rows // align) * align)
    if R_total <= cap_rows:
        block_R, n_tiles = R_total, 1           # single tile: full-dim block, no overhang
        ragged_rows = False
    else:
        block_R = cap_rows
        n_tiles = -(-R_total // block_R)
        ragged_rows = (n_tiles * block_R) != R_total

    kernel = functools.partial(_focal_kernel, has_mask=mask is not None,
                               rows_total=R_total if ragged_rows else None)

    data_spec = pl.BlockSpec((1, C, block_R, L), lambda b, r: (b, 0, r, 0))
    in_specs = [data_spec, data_spec]
    args = [pred_v, gt_v]
    if mask is not None:
        in_specs.append(pl.BlockSpec((1, block_R, L), lambda b, r: (b, r, 0)))
        args.append(mask_v)

    partials = pl.pallas_call(
        kernel,
        out_shape=jax.ShapeDtypeStruct((B * n_tiles, 16, L), jnp.float32),
        grid=(B, n_tiles),
        in_specs=in_specs,
        out_specs=pl.BlockSpec((1, 16, L), lambda b, r: (b * n_tiles + r, 0, 0)),
        compiler_params=pltpu.CompilerParams(
            dimension_semantics=("parallel", "parallel"),
            vmem_limit_bytes=_VMEM_LIMIT_BYTES),
    )(*args)

    loss_sum = jnp.sum(partials[:, 0:8, :])
    num_pos = jnp.sum(partials[:, 8:16, :])
    denom = jnp.where(num_pos == 0.0, 1.0, num_pos)
    # pos_loss sums to 0 whenever num_pos == 0, so -(pos + neg) == -neg there.
    return jnp.where(num_pos == 0.0, -loss_sum, -loss_sum / denom)


def _reference(out, target, mask=None):
    """Pure-jnp reference matching neg_loss_cornernet exactly."""
    pred = out.astype(jnp.float32)
    gt = target.astype(jnp.float32)
    pos_inds = (gt == 1.0).astype(jnp.float32)
    neg_inds = (gt < 1.0).astype(jnp.float32)
    neg_weights = jnp.power(1.0 - gt, 4)
    pos_loss = jnp.log(pred) * jnp.power(1.0 - pred, 2) * pos_inds
    neg_loss = jnp.log(1.0 - pred) * jnp.power(pred, 2) * neg_weights * neg_inds
    if mask is not None:
        m = mask[:, None, :, :].astype(jnp.float32)
        pos_loss = pos_loss * m
        neg_loss = neg_loss * m
        num_pos = jnp.sum(pos_inds * m)
    else:
        num_pos = jnp.sum(pos_inds)
    pos_s = jnp.sum(pos_loss)
    neg_s = jnp.sum(neg_loss)
    return jnp.where(num_pos == 0.0, -neg_s, -(pos_s + neg_s) / num_pos)


if __name__ == "__main__":
    key = jax.random.PRNGKey(0)

    def make_inputs(k, B, C, H, W):
        k_pred, k_gt, k_pos, k_mask = jax.random.split(k, 4)
        pred = jax.nn.sigmoid(jax.random.normal(k_pred, (B, C, H, W), dtype=jnp.float32))
        pred = jnp.clip(pred, 1e-4, 1.0 - 1e-4)          # CenterNet-style clamp
        gt = jax.random.uniform(k_gt, (B, C, H, W), dtype=jnp.float32, maxval=0.999)
        peak = jax.random.uniform(k_pos, (B, C, H, W)) > 0.98
        gt = jnp.where(peak, 1.0, gt)                    # a handful of exact-1.0 peaks
        m = (jax.random.uniform(k_mask, (B, H, W)) > 0.3).astype(jnp.float32)
        return pred, gt, m

    keys = jax.random.split(key, 3)

    # 1) H*W multiple of 128 -> dense 128-lane row path, single tile; masked + unmasked.
    pred, gt, mask = make_inputs(keys[0], 2, 4, 16, 16)
    cases = [(pred, gt, mask, {}), (pred, gt, None, {})]

    # 2) ragged H*W (not a multiple of 128) -> native (H, W) layout path, no padding copy.
    pred_r, gt_r, mask_r = make_inputs(keys[1], 2, 3, 8, 24)
    cases.append((pred_r, gt_r, mask_r, {}))

    # 3) tiny block budget -> several row tiles per batch with an overhanging last tile
    #    (exercises in-kernel tail masking and the per-tile partial outputs).
    pred_t, gt_t, mask_t = make_inputs(keys[2], 2, 4, 48, 48)
    cases.append((pred_t, gt_t, mask_t, dict(max_block_bytes=4096)))

    for i, (p, g, m, kw) in enumerate(cases):
        got = jax.block_until_ready(focal_loss_centernet(p, g, m, **kw))
        want = _reference(p, g, m)
        assert jnp.allclose(got, want, rtol=1e-4, atol=1e-5), (i, got, want)

    print("KERNEL_OK")
</pallas_src>

<mosaic_0001>
module attributes {stable_mosaic.version = 11 : i64} {
  func.func @_focal_kernel(%arg0: i32, %arg1: i32, %arg2: memref<1x4x2x128xf32, #tpu.memory_space<vmem>>, %arg3: memref<1x4x2x128xf32, #tpu.memory_space<vmem>>, %arg4: memref<1x2x128xf32, #tpu.memory_space<vmem>>, %arg5: memref<1x16x128xf32, #tpu.memory_space<vmem>>) attributes {dimension_semantics = [#tpu.dimension_semantics<parallel>, #tpu.dimension_semantics<parallel>], iteration_bounds = array<i64: 2, 1>, scalar_prefetch = 0 : i64, scratch_operands = 0 : i64, tpu.core_type = #tpu.core_type<tc>, window_params = [{transform_indices = @transform_0, window_bounds = array<i64: 1, 4, 2, 128>}, {transform_indices = @transform_1, window_bounds = array<i64: 1, 4, 2, 128>}, {transform_indices = @transform_2, window_bounds = array<i64: 1, 2, 128>}, {transform_indices = @transform_3, window_bounds = array<i64: 1, 16, 128>}]} {
    %c0 = arith.constant 0 : index
    %c0_0 = arith.constant 0 : index
    %c0_1 = arith.constant 0 : index
    %c0_2 = arith.constant 0 : index
    %0 = vector.load %arg2[%c0, %c0_0, %c0_1, %c0_2] : memref<1x4x2x128xf32, #tpu.memory_space<vmem>>, vector<1x4x2x128xf32>
    %1 = vector.shape_cast %0 : vector<1x4x2x128xf32> to vector<4x2x128xf32>
    %c0_3 = arith.constant 0 : index
    %c0_4 = arith.constant 0 : index
    %c0_5 = arith.constant 0 : index
    %c0_6 = arith.constant 0 : index
    %2 = vector.load %arg3[%c0_3, %c0_4, %c0_5, %c0_6] : memref<1x4x2x128xf32, #tpu.memory_space<vmem>>, vector<1x4x2x128xf32>
    %3 = vector.shape_cast %2 : vector<1x4x2x128xf32> to vector<4x2x128xf32>
    %cst = arith.constant 1.000000e+00 : f32
    %4 = vector.broadcast %cst : f32 to vector<4x2x128xf32>
    %5 = arith.cmpf oeq, %3, %4 : vector<4x2x128xf32>
    %cst_7 = arith.constant 1.000000e+00 : f32
    %6 = vector.broadcast %cst_7 : f32 to vector<4x2x128xf32>
    %7 = arith.subf %6, %1 : vector<4x2x128xf32>
    %8 = arith.select %5, %1, %7 : vector<4x2x128xi1>, vector<4x2x128xf32>
    %cst_8 = arith.constant 1.000000e+00 : f32
    %9 = vector.broadcast %cst_8 : f32 to vector<4x2x128xf32>
    %10 = arith.subf %9, %3 : vector<4x2x128xf32>
    %11 = arith.mulf %10, %10 : vector<4x2x128xf32>
    %12 = arith.mulf %7, %7 : vector<4x2x128xf32>
    %13 = arith.mulf %1, %1 : vector<4x2x128xf32>
    %14 = arith.mulf %11, %11 : vector<4x2x128xf32>
    %15 = arith.mulf %13, %14 : vector<4x2x128xf32>
    %16 = arith.select %5, %12, %15 : vector<4x2x128xi1>, vector<4x2x128xf32>
    %c0_9 = arith.constant 0 : index
    %c0_10 = arith.constant 0 : index
    %c0_11 = arith.constant 0 : index
    %17 = vector.load %arg4[%c0_9, %c0_10, %c0_11] : memref<1x2x128xf32, #tpu.memory_space<vmem>>, vector<1x2x128xf32>
    %18 = vector.shape_cast %17 : vector<1x2x128xf32> to vector<2x128xf32>
    %19 = vector.shape_cast %18 : vector<2x128xf32> to vector<1x2x128xf32>
    %20 = vector.broadcast %19 : vector<1x2x128xf32> to vector<4x2x128xf32>
    %21 = arith.mulf %16, %20 : vector<4x2x128xf32>
    %cst_12 = arith.constant 0.000000e+00 : f32
    %22 = vector.shape_cast %19 : vector<1x2x128xf32> to vector<1x2x128xf32>
    %23 = vector.broadcast %22 : vector<1x2x128xf32> to vector<4x2x128xf32>
    %24 = vector.broadcast %cst_12 : f32 to vector<4x2x128xf32>
    %25 = arith.select %5, %23, %24 : vector<4x2x128xi1>, vector<4x2x128xf32>
    %26 = math.log %8 : vector<4x2x128xf32>
    %27 = arith.mulf %26, %21 : vector<4x2x128xf32>
    %cst_13 = arith.constant dense<0.000000e+00> : vector<2x128xf32>
    %28 = vector.multi_reduction <add>, %27, %cst_13 [0] : vector<4x2x128xf32> to vector<2x128xf32>
    %cst_14 = arith.constant dense<0.000000e+00> : vector<128xf32>
    %29 = vector.multi_reduction <add>, %28, %cst_14 [0] : vector<2x128xf32> to vector<128xf32>
    %30 = vector.shape_cast %29 : vector<128xf32> to vector<1x128xf32>
    %31 = tpu.iota {dimensions = array<i32: 0>} : vector<8x128xi32>
    %c0_i32 = arith.constant 0 : i32
    %32 = vector.broadcast %c0_i32 : i32 to vector<8x128xi32>
    %33 = arith.cmpi eq, %31, %32 : vector<8x128xi32>
    %cst_15 = arith.constant 0.000000e+00 : f32
    %34 = vector.shape_cast %30 : vector<1x128xf32> to vector<1x128xf32>
    %35 = vector.broadcast %34 : vector<1x128xf32> to vector<8x128xf32>
    %36 = vector.broadcast %cst_15 : f32 to vector<8x128xf32>
    %37 = arith.select %33, %35, %36 : vector<8x128xi1>, vector<8x128xf32>
    %c0_16 = arith.constant 0 : index
    %c0_17 = arith.constant 0 : index
    %c0_18 = arith.constant 0 : index
    %38 = vector.load %arg5[%c0_16, %c0_17, %c0_18] : memref<1x16x128xf32, #tpu.memory_space<vmem>>, vector<1x8x128xf32>
    %39 = vector.shape_cast %38 : vector<1x8x128xf32> to vector<8x128xf32>
    %40 = vector.shape_cast %37 : vector<8x128xf32> to vector<1x8x128xf32>
    tpu.vector_store %arg5[%c0_16, %c0_17, %c0_18], %40 {strides = array<i32>} : memref<1x16x128xf32, #tpu.memory_space<vmem>>, vector<1x8x128xf32>,
    %cst_19 = arith.constant dense<0.000000e+00> : vector<2x128xf32>
    %41 = vector.multi_reduction <add>, %25, %cst_19 [0] : vector<4x2x128xf32> to vector<2x128xf32>
    %cst_20 = arith.constant dense<0.000000e+00> : vector<128xf32>
    %42 = vector.multi_reduction <add>, %41, %cst_20 [0] : vector<2x128xf32> to vector<128xf32>
    %43 = vector.shape_cast %42 : vector<128xf32> to vector<1x128xf32>
    %44 = tpu.iota {dimensions = array<i32: 0>} : vector<8x128xi32>
    %c0_i32_21 = arith.constant 0 : i32
    %45 = vector.broadcast %c0_i32_21 : i32 to vector<8x128xi32>
    %46 = arith.cmpi eq, %44, %45 : vector<8x128xi32>
    %cst_22 = arith.constant 0.000000e+00 : f32
    %47 = vector.shape_cast %43 : vector<1x128xf32> to vector<1x128xf32>
    %48 = vector.broadcast %47 : vector<1x128xf32> to vector<8x128xf32>
    %49 = vector.broadcast %cst_22 : f32 to vector<8x128xf32>
    %50 = arith.select %46, %48, %49 : vector<8x128xi1>, vector<8x128xf32>
    %c0_23 = arith.constant 0 : index
    %c8 = arith.constant 8 : index
    %c0_24 = arith.constant 0 : index
    %51 = vector.load %arg5[%c0_23, %c8, %c0_24] : memref<1x16x128xf32, #tpu.memory_space<vmem>>, vector<1x8x128xf32>
    %52 = vector.shape_cast %51 : vector<1x8x128xf32> to vector<8x128xf32>
    %53 = vector.shape_cast %50 : vector<8x128xf32> to vector<1x8x128xf32>
    tpu.vector_store %arg5[%c0_23, %c8, %c0_24], %53 {strides = array<i32>} : memref<1x16x128xf32, #tpu.memory_space<vmem>>, vector<1x8x128xf32>,
    return
  }
  func.func @transform_0(%arg0: i32, %arg1: i32) -> (i32, i32, i32, i32) {
    %c0_i32 = arith.constant 0 : i32
    %c0_i32_0 = arith.constant 0 : i32
    %c0_i32_1 = arith.constant 0 : i32
    return %arg0, %c0_i32, %arg1, %c0_i32_0 : i32, i32, i32, i32
  }
  func.func @transform_1(%arg0: i32, %arg1: i32) -> (i32, i32, i32, i32) {
    %c0_i32 = arith.constant 0 : i32
    %c0_i32_0 = arith.constant 0 : i32
    %c0_i32_1 = arith.constant 0 : i32
    return %arg0, %c0_i32, %arg1, %c0_i32_0 : i32, i32, i32, i32
  }
  func.func @transform_2(%arg0: i32, %arg1: i32) -> (i32, i32, i32) {
    %c0_i32 = arith.constant 0 : i32
    %c0_i32_0 = arith.constant 0 : i32
    return %arg0, %arg1, %c0_i32 : i32, i32, i32
  }
  func.func @transform_3(%arg0: i32, %arg1: i32) -> (i32, i32, i32) {
    %c1_i32 = arith.constant 1 : i32
    %0 = arith.muli %arg0, %c1_i32 : i32
    %1 = arith.addi %0, %arg1 : i32
    %c0_i32 = arith.constant 0 : i32
    %c0_i32_0 = arith.constant 0 : i32
    %c0_i32_1 = arith.constant 0 : i32
    return %1, %c0_i32, %c0_i32_0 : i32, i32, i32
  }
}

</mosaic_0001>

<bundles_post_ra>
// kernel: tpu_custom_call.1
= control target key start
LH: loop header
LB: loop body
LE: loop exit
PB: predicated region body
PF: predicated region fallthrough
CT: control target
= control target key end

     0   :  { %s1038_s0 = inlined_call_operand.hbm [shape: f32[2,4,2,128], index: 0, kind: input, shape index: {}]   ;;  %s1039_s1 = inlined_call_operand.hbm [shape: f32[2,4,2,128], index: 1, kind: input, shape index: {}]   ;;  %s1040_s2 = inlined_call_operand.hbm [shape: f32[2,2,128], index: 2, kind: input, shape index: {}]   ;;  %s1041_s3 = inlined_call_operand.hbm [shape: f32[2,16,128], index: 3, kind: output, shape index: {}]  }
   0x1   :  { %1050 = sst [smem:[#allocation19_spill]] %s1039_s1 }
   0x2   :  { %8 = vsyncpa [#allocation3], 0 }
   0x3   :  { %10 = vsyncpa [#allocation3 + $0x1], 0 }
   0x4   :  { %11 = vsyncpa [#allocation6], 0 }
   0x5   :  { %13 = vsyncpa [#allocation6 + $0x1], 0 }
   0x6   :  { %14 = vsyncpa [#allocation4], 0 }
   0x7   :  { %16 = vsyncpa [#allocation4 + $0x1], 0  ;;  %s856_s12 = smov 0   ;;  %s858_s13 = smov 0  }
   0x8   :  { %s860_s14 = smov 0   ;;  %s862_s15 = smov 0  }
   0x9   :  { %s864_s16 = smov 0   ;;  %s866_s17 = smov 0  }
   0xa LB: > { %1051 = sst [smem:[#allocation12_spill]] %s810_s12  ;;  %s887_s18 = sadd.s32 4294967295, %s830_s17   ;;  %s830_s17 = sphi %s866_s17, %s22_s17   ;;  %s826_s16 = sphi %s864_s16, %s1075_s16   ;;  %s822_s15 = sphi %s862_s15, %s1074_s15   ;;  %s818_s14 = sphi %s860_s14, %s1070_s14   ;;  %s814_s13 = sphi %s858_s13, %s1073_s13   ;;  %s810_s12 = sphi %s856_s12, %s1072_s12  }
   0xb   : > { %1052 = sst [smem:[#allocation13_spill]] %s818_s14  ;;  %s546_s19 = sadd.s32 4294967294, %s830_s17  }
   0xc   : > { %1053 = sst [smem:[#allocation14_spill]] %s830_s17  ;;  %s34_s20 = sadd.s32 1, %s826_s16 }
   0xd   : > { %s43_s21 = sadd.s32 1, %s818_s14  ;;  %p36_p0 = scmp.ge.s32.totalorder %s34_s20, 2 }
   0xe   : > { %p50_p1 = scmp.ne.s32.totalorder %s818_s14, %s814_s13  ;;  %p51_p2 = scmp.eq.s32.totalorder %s830_s17, 0 }
   0xf   : > { %p56_p3 = scmp.ne.s32.totalorder %s814_s13, %s810_s12  ;;  %s1077_s20 = smov (%p36_p0, %s34_s20), 0 }
  0x10   : > { %1054 = sst [smem:[#allocation15_spill]] %s1077_s20  ;;  %p899_p4 = por %p51_p2, %p50_p1 }
  0x11   : > { %p57_p5 = scmp.eq.s32.totalorder %s887_s18, 0  ;;  %s38_s23 = ssub.s32 %s826_s16, %s1077_s20 }
  0x12   : > { %p138_p6 = scmp.eq.s32.totalorder %s887_s18, 1  ;;  %p41_p7 = scmp.eq.s32.totalorder %s38_s23, 0 }
  0x13   : > { %p907_p8 = por %p57_p5, %p56_p3  ;;  %p144_p10 = scmp.eq.s32.totalorder %s546_s19, 1 }
  0x14   : > { %p911_p9 = por %p138_p6, %p50_p1  ;;  %p548_p12 = scmp.ge.s32.totalorder %s830_s17, 2 }
  0x15   : > { %s916_s26 = scalar_select %p41_p7, %s818_s14, %s43_s21  }
  0x16   : > { %s1057_s25 = scalar_select %p911_p9, 1, 0 }
  0x17   : > { %1059 = sst [smem:[#allocation17_spill]] %s916_s26  ;;  %p918_p11 = por %p144_p10, %p56_p3 }
  0x18   : > { %1058 = sst [smem:[#allocation16_spill]] %s1057_s25  ;;  %p592_p13 = scmp.lt.s32.totalorder %s830_s17, 2 }
  0x19   : > { %s1060_s27 = scalar_select %p918_p11, 1, 0 }
  0x1a   : > { %s925_s28 = sand.u32 1, %s818_s14   ;;  %s567_s30 = sshll.u32 %s826_s16, 3 }
  0x1b   : > { %1061 = sst [smem:[#allocation18_spill]] %s1060_s27  ;;  %s549_s29 = sshll.u32 %s925_s28, 3 }
  0x1c   : > { %p931_p0 = pnand %p592_p13, %p899_p4  ;;  %s187_s5 = sand.u32 1, %s830_s17  }
  0x1d   : > { %s1063_s1 = sld [smem:[#allocation19_spill]]  ;;  %s191_s10 = scalar_lea.vmem [#allocation5], %s549_s29 }
  0x1e   : > { %s200_s11 = sshll.u32 %s191_s10, 4  ;;  %s188_s19 = scalar_lea.sflag [#allocation6], %s187_s5  ;;  %s201_s11 = int_to_ptr.vmem [resolvable:$true] %s200_s11 }
  0x1f   : > { %s832_s21 = smov 32   ;;  %s833_s22 = smov 2  }
  0x20   : > { %p557_p1 = scmp.ge.s32.totalorder %s830_s17, 1  ;;  %p228_p2 = scmp.lt.s32.totalorder %s830_s17, 3 }
  0x21   : > { %s165_s5 = scalar_lea.sflag [#allocation3], %s925_s28 }
  0x22   : > { %p943_p3 = pnand %p557_p1, %p228_p2 }
  0x23   : > { %s197_s8 = scalar_lea.hbm %s1063_s1, %s567_s30  ;;  %s168_s1 = scalar_lea.vmem [#allocation2], %s549_s29 }
  0x24   : > { %s198_s9 = sshll.u32 %s197_s8, 4  ;;  %s174_s8 = scalar_lea.hbm %s1038_s0, %s567_s30  ;;  %s199_s9 = int_to_ptr.hbm [resolvable:$true] %s198_s9 }
  0x25   : > { %584 = dma.hbm_to_vmem [thread:$0]  (!%p931_p0), %s199_s9, 128, %s201_s11, %s188_s19, %s832_s21, %s832_s21, %s833_s22  }
  0x26   : > { %s175_s10 = sshll.u32 %s174_s8, 4  ;;  %s177_s20 = sshll.u32 %s168_s1, 4  ;;  %s176_s10 = int_to_ptr.hbm [resolvable:$true] %s175_s10  ;;  %s178_s20 = int_to_ptr.vmem [resolvable:$true] %s177_s20 }
  0x27   : > { %581 = dma.hbm_to_vmem [thread:$0]  (!%p931_p0), %s176_s10, 128, %s178_s20, %s165_s5, %s832_s21, %s832_s21, %s833_s22  }
  0x28   : > { %s555_s9 = sshll.u32 %s925_s28, 1  ;;  %s556_s11 = sshll.u32 %s826_s16, 1 }
  0x29   : > { %s219_s17 = scalar_lea.hbm %s1040_s2, %s556_s11  ;;  %s214_s12 = scalar_lea.vmem [#allocation7], %s555_s9 }
  0x2a   : > { %s221_s27 = sshll.u32 %s219_s17, 4  ;;  %s223_s25 = sshll.u32 %s214_s12, 4  ;;  %s222_s27 = int_to_ptr.hbm [resolvable:$true] %s221_s27  ;;  %s224_s25 = int_to_ptr.vmem [resolvable:$true] %s223_s25 }
  0x2b   : > { %587 = dma.hbm_to_vmem [thread:$0]  (!%p931_p0), %s222_s27, 32, %s224_s25, %s188_s19  }
  0x2c   : > { %232 = sbr.rel (%p943_p3) target bundleno = 99 (0x63), region = 32  ;;  %s963_s1 = sand.u32 (!%p943_p3), 1, %s814_s13  }
  0x2d   : > { %s558_s20 = sshll.u32 (!%p943_p3), %s963_s1, 3  ;;  %s235_s28 = scalar_lea.sflag (!%p943_p3), [#allocation3], %s963_s1 }
  0x2e   : > { %s238_s14 = scalar_lea.vmem (!%p943_p3), [#allocation2], %s558_s20 }
  0x31   : > { %797 = dma.done.wait (%p907_p8), %s235_s28, 128  }
  0x32   : > { %799 = vsyncadd (%p907_p8), %s235_s28, 4294967168  ;;  %s244_s12 = sand.u32 1, %s887_s18   ;;  %s248_s25 = scalar_lea.vmem [#allocation5], %s558_s20 }
  0x33   : > { %s245_s17 = scalar_lea.sflag [#allocation6], %s244_s12 }
  0x34   : > { %801 = dma.done.wait (%p907_p8), %s245_s17, 160  }
  0x35   : > { %803 = vsyncadd (%p907_p8), %s245_s17, 4294967136  ;;  %v293_v0 = vld [vmem:[%s238_s14] sm:$0x3]  ;;  %v294_v1 = vld [vmem:[%s238_s14 + $0x2] sm:$0x3]  ;;  %s560_s18 = sshll.u32 %s963_s1, 1 }
  0x36   : > { %v295_v2 = vld [vmem:[%s238_s14 + $0x4] sm:$0x3]  ;;  %v296_v3 = vld [vmem:[%s238_s14 + $0x6] sm:$0x3]  ;;  %v297_v4 = vld [vmem:[%s248_s25] sm:$0x3]  ;;  %v325_v8 = vmul.f32 %v293_v0, %v293_v0  ;;  %v326_v9 = vmul.f32 %v294_v1, %v294_v1 }
  0x37   : > { %v298_v5 = vld [vmem:[%s248_s25 + $0x2] sm:$0x3]  ;;  %v299_v6 = vld [vmem:[%s248_s25 + $0x4] sm:$0x3]  ;;  %v300_v7 = vld [vmem:[%s248_s25 + $0x6] sm:$0x3]  ;;  %v327_v18 = vmul.f32 %v295_v2, %v295_v2  ;;  %v328_v19 = vmul.f32 %v296_v3, %v296_v3 }
  0x38   : > { %vm301_vm0 = vcmp.eq.f32.partialorder %v297_v4, 1.0  ;;  %vm302_vm1 = vcmp.eq.f32.partialorder %v298_v5, 1.0  ;;  %vm303_vm2 = vcmp.eq.f32.partialorder %v299_v6, 1.0  ;;  %vm304_vm3 = vcmp.eq.f32.partialorder %v300_v7, 1.0  ;;  %s258_s24 = scalar_lea.vmem [#allocation7], %s560_s18  ;;  %s561_s26 = sshll.u32 %s963_s1, 4 }
  0x39   : > { %v305_v10 = vsub.f32 1.0, %v293_v0  ;;  %v306_v11 = vsub.f32 1.0, %v294_v1  ;;  %v307_v12 = vsub.f32 1.0, %v295_v2  ;;  %v308_v13 = vsub.f32 1.0, %v296_v3  ;;  %v341_v38 = vld [vmem:[%s258_s24] sm:$0x3] }
  0x3a   : > { %v313_v14 = vsub.f32 1.0, %v297_v4  ;;  %v314_v15 = vsub.f32 1.0, %v298_v5  ;;  %vm362_vm4 = vcmask 1041408   ;;  %v315_v16 = vsub.f32 1.0, %v299_v6  ;;  %s569_s27 = sshll.u32 %s822_s15, 4  ;;  %s291_s21 = scalar_lea.vmem [#allocation8], %s561_s26 }
  0x3b   : > { %v316_v17 = vsub.f32 1.0, %v300_v7  ;;  %v309_v20 = vsel %vm301_vm0, %v293_v0, %v305_v10  ;;  %v310_v21 = vsel %vm302_vm1, %v294_v1, %v306_v11  ;;  %v311_v24 = vsel %vm303_vm2, %v295_v2, %v307_v12  ;;  %s411_s4 = scalar_lea.hbm %s1041_s3, %s569_s27  ;;  %s412_s22 = sshll.u32 %s291_s21, 4  ;;  %s413_s22 = int_to_ptr.vmem [resolvable:$true] %s412_s22 }
  0x3c   : > { %v317_v22 = vmul.f32 %v313_v14, %v313_v14  ;;  %v318_v23 = vmul.f32 %v314_v15, %v314_v15  ;;  %v312_v25 = vsel %vm304_vm3, %v296_v3, %v308_v13  ;;  %v319_v26 = vmul.f32 %v315_v16, %v315_v16  ;;  %s414_s23 = sshll.u32 %s411_s4, 4  ;;  %s399_s15 = scalar_lea.sflag [#allocation4], %s963_s1  ;;  %s415_s23 = int_to_ptr.hbm [resolvable:$true] %s414_s23 }
  0x3d   : > { %v320_v27 = vmul.f32 %v316_v17, %v316_v17  ;;  %v321_v28 = vmul.f32 %v305_v10, %v305_v10  ;;  %v322_v29 = vmul.f32 %v306_v11, %v306_v11  ;;  %v323_v32 = vmul.f32 %v307_v12, %v307_v12  ;;  %s758_s6 = sshra.s32 %s415_s23, 4  ;;  %s764_s5 = scalar_lea.hbm %s1041_s3, 32  ;;  %s759_s6 = int_to_ptr.hbm [resolvable:$true] %s758_s6 }
  0x3e   : > { %v329_v30 = vmul.f32 %v317_v22, %v317_v22  ;;  %v330_v31 = vmul.f32 %v318_v23, %v318_v23  ;;  %v331_v33 = vmul.f32 %v319_v26, %v319_v26  ;;  %646 = vlog2.f32 %v309_v20  ;;  %s760_s7 = scalar_lea.hbm %s759_s6, 16  ;;  %p765_p7 = scmp.lt.s32.totalorder %s759_s6, %s1041_s3 }
  0x3f   : > { %v332_v34 = vmul.f32 %v320_v27, %v320_v27  ;;  %v324_v35 = vmul.f32 %v308_v13, %v308_v13  ;;  %648 = vlog2.f32 %v310_v21  ;;  %v346_v41 = vsel %vm301_vm0, %v341_v38, 0.0  ;;  %p761_p4 = scmp.ne.s32.totalorder %s759_s6, %s760_s7  ;;  %p766_p8 = scmp.lt.s32.totalorder %s764_s5, %s760_s7 }
  0x40   : > { %v333_v36 = vmul.f32 %v329_v30, %v325_v8  ;;  %v334_v37 = vmul.f32 %v330_v31, %v326_v9  ;;  %v335_v39 = vmul.f32 %v331_v33, %v327_v18  ;;  %650 = vlog2.f32 %v311_v24 }
  0x41   : > { %v336_v40 = vmul.f32 %v332_v34, %v328_v19  ;;  %652 = vlog2.f32 %v312_v25  ;;  %v347_v44 = vsel %vm302_vm1, %v341_v38, 0.0  ;;  %v348_v49 = vsel %vm303_vm2, %v341_v38, 0.0  ;;  %p762_p5 = pnand %p761_p4, %p911_p9  ;;  %p767_p10 = por %p766_p8, %p765_p7 }
  0x42   : > { %v337_v42 = vsel %vm301_vm0, %v321_v28, %v333_v36  ;;  %v338_v43 = vsel %vm302_vm1, %v322_v29, %v334_v37  ;;  %v339_v45 = vsel %vm303_vm2, %v323_v32, %v335_v39  ;;  %v349_v51 = vsel %vm304_vm3, %v341_v38, 0.0 }
  0x43   : > { %v340_v46 = vsel %vm304_vm3, %v324_v35, %v336_v40  ;;  %v342_v47 = vmul.f32 %v341_v38, %v337_v42  ;;  %v343_v48 = vmul.f32 %v341_v38, %v338_v43  ;;  %v382_v52 = vsel %vm362_vm4, %v346_v41, 0.0  ;;  %p763_p6 = pneg %p762_p5 }
  0x44   : > { %v647_v50 = vpop.eup %646  ;;  %v383_v53 = vsel %vm362_vm4, %v347_v44, 0.0  ;;  %v385_v54 = vsel %vm362_vm4, %v348_v49, 0.0  ;;  %v344_v56 = vmul.f32 %v341_v38, %v339_v45  ;;  %v345_v60 = vmul.f32 %v341_v38, %v340_v46 }
  0x45   : > { %v649_v55 = vpop.eup %648  ;;  %v351_v57 = vmul.f32 0.6931472, %v647_v50  ;;  %v384_v58 = vadd.f32 %v383_v53, %v382_v52  ;;  %v387_v62 = vsel %vm362_vm4, %v349_v51, 0.0  ;;  %v377_v16 = vlaneseq  ;;  %p768_p13 = pnand %p767_p10, %p763_p6 }
  0x46   : > { %v651_v59 = vpop.eup %650  ;;  %v353_v61 = vmul.f32 0.6931472, %v649_v55 }
  0x47   : > { %v653_v63 = vpop.eup %652  ;;  %v355_v0 = vmul.f32 0.6931472, %v651_v59  ;;  %v358_v1 = vmul.f32 %v351_v57, %v342_v47  ;;  %v386_v2 = vadd.f32 %v385_v54, %v384_v58  ;;  %v378_v21 = vshrl.u32 %v377_v16, 7 }
  0x48   : > { %v357_v3 = vmul.f32 0.6931472, %v653_v63  ;;  %v359_v4 = vmul.f32 %v353_v61, %v343_v48 }
  0x49   : > { %v360_v5 = vmul.f32 %v355_v0, %v344_v56  ;;  %v363_v6 = vsel %vm362_vm4, %v358_v1, 0.0  ;;  %v388_v7 = vadd.f32 %v387_v62, %v386_v2  ;;  %vm379_vm5 = vcmp.eq.s32.totalorder %v378_v21, 0 }
  0x4a   : > { %v361_v8 = vmul.f32 %v357_v3, %v345_v60  ;;  %v364_v9 = vsel %vm362_vm4, %v359_v4, 0.0 }
  0x4b   : > { %v365_v10 = vadd.f32 %v364_v9, %v363_v6  ;;  %v366_v11 = vsel %vm362_vm4, %v360_v5, 0.0  ;;  %v389_v12 = vsel %vm362_vm4, %v388_v7, 0.0 }
  0x4c   : > { %v368_v13 = vsel %vm362_vm4, %v361_v8, 0.0  ;;  %v390_v14 = vrot.slane %v389_v12, 4 }
  0x4d   : > { %v367_v15 = vadd.f32 %v366_v11, %v365_v10 }
  0x4e   : > { %v391_v17 = vadd.f32 %v390_v14, %v389_v12 }
  0x4f   : > { %v369_v18 = vadd.f32 %v368_v13, %v367_v15 }
  0x50   : > { %v392_v19 = vrot.slane %v391_v17, 2 }
  0x51   : > { %v370_v20 = vsel %vm362_vm4, %v369_v18, 0.0 }
  0x52   : > { %v371_v22 = vrot.slane %v370_v20, 4  ;;  %v393_v23 = vadd.f32 %v392_v19, %v391_v17 }
  0x54   : > { %v372_v24 = vadd.f32 %v371_v22, %v370_v20  ;;  %v394_v25 = vrot.slane %v393_v23, 1 }
  0x56   : > { %v373_v26 = vrot.slane %v372_v24, 2  ;;  %v395_v27 = vadd.f32 %v394_v25, %v393_v23 }
  0x58   : > { %v374_v28 = vadd.f32 %v373_v26, %v372_v24  ;;  %v396_v29 = vsel %vm379_vm5, %v395_v27, 0.0 }
  0x59   : > { %397 = vst [vmem:[%s291_s21 + $0x8] sm:$0xff] %v396_v29 }
  0x5a   : > { %v375_v30 = vrot.slane %v374_v28, 1 }
  0x5c   : > { %v376_v31 = vadd.f32 %v375_v30, %v374_v28 }
  0x5e   : > { %v380_v32 = vsel %vm379_vm5, %v376_v31, 0.0 }
  0x5f   : > { %381 = vst [vmem:[%s291_s21] sm:$0xff] %v380_v32 }
  0x60   : > { %771 = shalt.err (!%p768_p13)
}
  0x61   : > { %s834_s1 = smov 128   ;;  %s835_s20 = smov 8  }
  0x62   : > { %576 = dma.vmem_to_hbm [thread:$0]  (%p911_p9), %s413_s22, 256, %s415_s23, %s399_s15, %s834_s1, %s834_s1, %s835_s20  }
  0x63 PF: > { %s1066_s28 = sld [smem:[#allocation12_spill]]  ;;  %p589_p0 = pnand %p548_p12, %p918_p11 }
  0x64   : > { %s1068_s12 = sld [smem:[#allocation14_spill]] }
  0x65   : > { %p590_p1 = pneg %p589_p0 }
  0x69   : > { %s429_s17 = sand.u32 1, %s1066_s28  }
  0x6a   : > { %s430_s25 = scalar_lea.sflag [#allocation4], %s429_s17 }
  0x6b   : > { %805 = dma.done.wait (%p590_p1), %s430_s25, 256  }
  0x6c   : > { %807 = vsyncadd (%p590_p1), %s430_s25, 4294967040  ;;  %s22_s17 = sadd.s32 1, %s1068_s12   ;;  %s1069_s18 = sld [smem:[#allocation13_spill]] }
  0x6d   : > { %p19_p2 = scmp.ge.s32.totalorder %s22_s17, 4   ;;  %s1070_s14 = sld [smem:[#allocation17_spill]] }
  0x6e   : > { %s1071_s24 = sld [smem:[#allocation15_spill]]  ;;  %s1072_s12 = smov %s814_s13 }
  0x6f   : > { %s1074_s15 = smov %s826_s16 }
  0x70   :  { %21 = sbr.rel (!%p19_p2) target bundleno = 10 (0xa), region = 101 }
  0x72   : > { %s1073_s13 = smov %s1069_s18 }
  0x74   : > { %s1075_s16 = smov %s1071_s24 }
  0x75   :  { %436 = vsyncpa [#allocation3], 1 }
  0x76   :  { %438 = vsyncpa [#allocation3 + $0x1], 1 }
  0x77   :  { %439 = vsyncpa [#allocation6], 1 }
  0x78   :  { %441 = vsyncpa [#allocation6 + $0x1], 1 }
  0x79   :  { %442 = vsyncpa [#allocation4], 1 }
  0x7a   :  { %444 = vsyncpa [#allocation4 + $0x1], 1 }

</bundles_post_ra>
